<compile_context>
chip_gen: v5e
topology: v5e:2x2
jax: 0.10.0
libtpu: 0.0.40
codegen_flags: <defaults>
</compile_context>

<pallas_src>
import functools

import jax
import jax.numpy as jnp
from jax.experimental import pallas as pl
from jax.experimental.pallas import tpu as pltpu


def _round_up(x: int, m: int) -> int:
    return (x + m - 1) // m * m


def _block_kernel_full(x_ref, w_ref, b_ref, g_ref, be_ref, o_ref, *, hidden):
    """Resident-weight path: grid = (batch_tiles,), whole weight in VMEM.

    x_ref:  (TB, Hp_in)      input tile (padded lanes are zero)
    w_ref:  (Hp_in, Hp_out)  full bf16 weight slab ((in, out) layout)
    b_ref:  (1, Hp_out)      linear bias (f32, zero-padded)
    g_ref:  (1, Hp_in)       LayerNorm weight (zero-padded)
    be_ref: (1, Hp_in)       LayerNorm bias  (zero-padded)
    o_ref:  (TB, Hp_out)     output tile
    """
    x = x_ref[...].astype(jnp.float32)
    inv_h = 1.0 / hidden
    # Padded lanes are zero, so plain sums give the masked statistics.
    mean = jnp.sum(x, axis=-1, keepdims=True) * inv_h
    var = jnp.sum(x * x, axis=-1, keepdims=True) * inv_h - mean * mean
    xn = (x - mean) * jax.lax.rsqrt(var + 1e-5)
    # gamma/beta are zero in padded lanes -> padded lanes of y are exactly 0
    # and contribute nothing to the matmul below.
    y = (xn * g_ref[...] + be_ref[...]).astype(jnp.bfloat16)
    z = jnp.dot(y, w_ref[...], preferred_element_type=jnp.float32) + b_ref[...]
    # sigmoid(z) = 0.5 * tanh(z / 2) + 0.5  (single EUP push, no approx recip)
    o_ref[...] = (0.5 * jnp.tanh(0.5 * z) + 0.5).astype(o_ref.dtype)
    # Dropout (p=dropout_percent) is identity at inference time.


def _block_kernel_tiled(x_ref, w_ref, b_ref, g_ref, be_ref, o_ref, y_scr, *,
                        hidden):
    """N-tiled fallback for very large hidden: LayerNorm computed once per
    batch tile (j == 0), cached in bf16 VMEM scratch, reused for every N tile."""
    @pl.when(pl.program_id(1) == 0)
    def _():
        x = x_ref[...].astype(jnp.float32)
        inv_h = 1.0 / hidden
        mean = jnp.sum(x, axis=-1, keepdims=True) * inv_h
        var = jnp.sum(x * x, axis=-1, keepdims=True) * inv_h - mean * mean
        xn = (x - mean) * jax.lax.rsqrt(var + 1e-5)
        y_scr[...] = (xn * g_ref[...] + be_ref[...]).astype(jnp.bfloat16)

    z = jnp.dot(y_scr[...], w_ref[...],
                preferred_element_type=jnp.float32) + b_ref[...]
    o_ref[...] = (0.5 * jnp.tanh(0.5 * z) + 0.5).astype(o_ref.dtype)


def prepare_block_params(w, b, gamma, beta):
    """One-time (model-load) parameter prep, hoisted out of the forward path.

    w is nn.Linear weight (out_features, in_features); we ship the kernel an
    (in, out) bf16 layout padded to 128-lane multiples (independently per axis,
    so a non-square linear would also be handled correctly).
    """
    out_f, in_f = w.shape
    hp_in = _round_up(in_f, 128)
    hp_out = _round_up(out_f, 128)
    wp = jnp.pad(w.T.astype(jnp.bfloat16),
                 ((0, hp_in - in_f), (0, hp_out - out_f)))
    b2 = jnp.pad(b.astype(jnp.float32), (0, hp_out - out_f)).reshape(1, hp_out)
    g2 = jnp.pad(gamma.astype(jnp.float32), (0, hp_in - in_f)).reshape(1, hp_in)
    be2 = jnp.pad(beta.astype(jnp.float32), (0, hp_in - in_f)).reshape(1, hp_in)
    return dict(w=wp, b=b2, gamma=g2, beta=be2,
                in_features=in_f, out_features=out_f,
                hp_in=hp_in, hp_out=hp_out)


def block_forward(x, params, *, tile_b=None, tile_n=None):
    """Apply Block (eval mode) to x of shape (batch, hidden).

    params: output of prepare_block_params (computed once at model load).
    tile_n: optional override forcing the N-tiled path (used for testing /
            very large hidden).
    """
    batch, in_f = x.shape
    hidden = params["in_features"]
    out_f = params["out_features"]
    hp_in, hp_out = params["hp_in"], params["hp_out"]
    assert in_f == hidden
    wp, b2, g2, be2 = params["w"], params["b"], params["gamma"], params["beta"]

    # Batch: pad to the sublane quantum (8) only -- never a full tile of garbage.
    batch_p = _round_up(batch, 8)
    # Cap the batch tile for very large hidden (v7x 64 MiB physical VMEM,
    # v5e 16 MiB default scoped budget).
    cap = 512 if max(hp_in, hp_out) <= 2048 else 256
    if tile_b is None:
        tile_b = next(t for t in (512, 256, 128, 64, 32, 16, 8)
                      if t <= cap and batch_p % t == 0)
    else:
        tile_b = max(8, _round_up(tile_b, 8))
        batch_p = _round_up(batch_p, tile_b)

    # Skip the x pad entirely when already lane/sublane aligned.
    # TODO(synk): optionally ship x in bf16 upstream to halve x HBM traffic.
    if batch_p == batch and hp_in == in_f:
        xp = x
    else:
        xp = jnp.pad(x, ((0, batch_p - batch), (0, hp_in - in_f)))

    x_bytes = x.dtype.itemsize
    grid_b = batch_p // tile_b
    weight_bytes = hp_in * hp_out * 2  # bf16

    # Path A: whole weight resident (DMAed once) whenever it fits comfortably.
    use_full_weight = (tile_n is None) and (weight_bytes <= (8 << 20))

    if use_full_weight:
        kernel = functools.partial(_block_kernel_full, hidden=hidden)
        grid = (grid_b,)
        in_specs = [
            pl.BlockSpec((tile_b, hp_in), lambda i: (i, 0)),
            pl.BlockSpec((hp_in, hp_out), lambda i: (0, 0)),  # resident weight
            pl.BlockSpec((1, hp_out), lambda i: (0, 0)),
            pl.BlockSpec((1, hp_in), lambda i: (0, 0)),
            pl.BlockSpec((1, hp_in), lambda i: (0, 0)),
        ]
        out_specs = pl.BlockSpec((tile_b, hp_out), lambda i: (i, 0))
        scratch = []
        semantics = ("parallel",)   # batch split across TCs on v7x
        vmem_need = (2 * tile_b * hp_in * x_bytes      # x double-buffer
                     + 2 * tile_b * hp_out * x_bytes   # out double-buffer
                     + 2 * weight_bytes                # weight (conservative)
                     + 8 * (hp_in + hp_out) * 4)       # small params
    else:
        if tile_n is None:
            tile_n = next(t for t in (512, 256, 128) if hp_out % t == 0)
        kernel = functools.partial(_block_kernel_tiled, hidden=hidden)
        grid = (grid_b, hp_out // tile_n)
        in_specs = [
            pl.BlockSpec((tile_b, hp_in), lambda i, j: (i, 0)),   # const in j
            pl.BlockSpec((hp_in, tile_n), lambda i, j: (0, j)),
            pl.BlockSpec((1, tile_n), lambda i, j: (0, j)),
            pl.BlockSpec((1, hp_in), lambda i, j: (0, 0)),
            pl.BlockSpec((1, hp_in), lambda i, j: (0, 0)),
        ]
        out_specs = pl.BlockSpec((tile_b, tile_n), lambda i, j: (i, j))
        scratch = [pltpu.VMEM((tile_b, hp_in), jnp.bfloat16)]     # LN cache
        semantics = ("parallel", "arbitrary")
        vmem_need = (2 * tile_b * hp_in * x_bytes
                     + 2 * tile_b * tile_n * x_bytes
                     + 2 * hp_in * tile_n * 2
                     + tile_b * hp_in * 2
                     + 8 * (hp_in + hp_out) * 4)

    vmem_limit = int(min(64 << 20, max(32 << 20, 2 * vmem_need)))

    out = pl.pallas_call(
        kernel,
        out_shape=jax.ShapeDtypeStruct((batch_p, hp_out), x.dtype),
        grid_spec=pltpu.PrefetchScalarGridSpec(
            num_scalar_prefetch=0,
            grid=grid,
            in_specs=in_specs,
            out_specs=out_specs,
            scratch_shapes=scratch),
        compiler_params=pltpu.CompilerParams(
            dimension_semantics=semantics,
            vmem_limit_bytes=vmem_limit),
    )(xp, wp, b2, g2, be2)
    return out[:batch, :out_f]


def block_reference(x, w, b, gamma, beta):
    """Pure-JAX f32 reference matching PyTorch Block (eval mode)."""
    xf = x.astype(jnp.float32)
    mean = jnp.mean(xf, axis=-1, keepdims=True)
    var = jnp.mean((xf - mean) ** 2, axis=-1, keepdims=True)
    xn = (xf - mean) / jnp.sqrt(var + 1e-5)
    y = xn * gamma + beta
    z = y @ w.T + b
    return jax.nn.sigmoid(z).astype(x.dtype)


if __name__ == "__main__":
    key = jax.random.PRNGKey(0)

    def make_params(hidden, k):
        kw, kb = jax.random.split(k)
        w = jax.random.normal(kw, (hidden, hidden), dtype=jnp.float32) * 0.1
        b = jax.random.normal(kb, (hidden,), dtype=jnp.float32) * 0.1
        gamma = jnp.ones((hidden,), dtype=jnp.float32)
        beta = jnp.zeros((hidden,), dtype=jnp.float32)
        return w, b, gamma, beta

    # TODO(synk): training-mode dropout (stateful RNG mask) not implemented;
    # eval-mode (identity) semantics are reproduced.

    k1, k2, k3, k4 = jax.random.split(key, 4)

    # --- hidden=32: resident-weight path, aligned batch ---
    hidden = 32
    w, b, gamma, beta = make_params(hidden, k1)
    params = prepare_block_params(w, b, gamma, beta)   # one-time prep

    x = jax.random.normal(k2, (8, hidden), dtype=jnp.float32)
    out = jax.block_until_ready(block_forward(x, params))
    ref = block_reference(x, w, b, gamma, beta)
    assert out.shape == x.shape
    assert jnp.allclose(out, ref, atol=2e-2, rtol=2e-2)

    # --- odd batch (20 -> padded to 24 rows only, exercises padding path) ---
    x2 = jax.random.normal(k3, (20, hidden), dtype=jnp.float32)
    out2 = jax.block_until_ready(block_forward(x2, params))
    ref2 = block_reference(x2, w, b, gamma, beta)
    assert out2.shape == x2.shape
    assert jnp.allclose(out2, ref2, atol=2e-2, rtol=2e-2)

    # --- forced N-tiled fallback path (>1 output tile, LN-cache in scratch) ---
    hidden3 = 256
    w3, b3, g3, be3 = make_params(hidden3, k4)
    params3 = prepare_block_params(w3, b3, g3, be3)
    x3 = jax.random.normal(k2, (24, hidden3), dtype=jnp.float32)
    out3 = jax.block_until_ready(block_forward(x3, params3, tile_n=128))
    ref3 = block_reference(x3, w3, b3, g3, be3)
    assert out3.shape == x3.shape
    assert jnp.allclose(out3, ref3, atol=2e-2, rtol=2e-2)

    print("KERNEL_OK")
</pallas_src>

<mosaic_0001>
module attributes {stable_mosaic.version = 11 : i64} {
  func.func @_block_kernel_full(%arg0: i32, %arg1: memref<8x128xf32, #tpu.memory_space<vmem>>, %arg2: memref<128x128xbf16, #tpu.memory_space<vmem>>, %arg3: memref<1x128xf32, #tpu.memory_space<vmem>>, %arg4: memref<1x128xf32, #tpu.memory_space<vmem>>, %arg5: memref<1x128xf32, #tpu.memory_space<vmem>>, %arg6: memref<8x128xf32, #tpu.memory_space<vmem>>) attributes {dimension_semantics = [#tpu.dimension_semantics<parallel>], iteration_bounds = array<i64: 1>, scalar_prefetch = 0 : i64, scratch_operands = 0 : i64, tpu.core_type = #tpu.core_type<tc>, window_params = [{transform_indices = @transform_0, window_bounds = array<i64: 8, 128>}, {pipeline_mode = #tpu.pipeline_mode<synchronous>, transform_indices = @transform_1, window_bounds = array<i64: 128, 128>}, {pipeline_mode = #tpu.pipeline_mode<synchronous>, transform_indices = @transform_2, window_bounds = array<i64: 1, 128>}, {pipeline_mode = #tpu.pipeline_mode<synchronous>, transform_indices = @transform_3, window_bounds = array<i64: 1, 128>}, {pipeline_mode = #tpu.pipeline_mode<synchronous>, transform_indices = @transform_4, window_bounds = array<i64: 1, 128>}, {transform_indices = @transform_5, window_bounds = array<i64: 8, 128>}]} {
    %c0 = arith.constant 0 : index
    %c0_0 = arith.constant 0 : index
    %0 = vector.load %arg1[%c0, %c0_0] : memref<8x128xf32, #tpu.memory_space<vmem>>, vector<8x128xf32>
    %cst = arith.constant dense<0.000000e+00> : vector<8xf32>
    %1 = vector.multi_reduction <add>, %0, %cst [1] : vector<8x128xf32> to vector<8xf32>
    %2 = vector.shape_cast %1 : vector<8xf32> to vector<8x1xf32>
    %cst_1 = arith.constant 3.125000e-02 : f32
    %3 = vector.broadcast %cst_1 : f32 to vector<8x1xf32>
    %4 = arith.mulf %2, %3 : vector<8x1xf32>
    %5 = arith.mulf %0, %0 : vector<8x128xf32>
    %cst_2 = arith.constant dense<0.000000e+00> : vector<8xf32>
    %6 = vector.multi_reduction <add>, %5, %cst_2 [1] : vector<8x128xf32> to vector<8xf32>
    %7 = vector.shape_cast %6 : vector<8xf32> to vector<8x1xf32>
    %cst_3 = arith.constant 3.125000e-02 : f32
    %8 = vector.broadcast %cst_3 : f32 to vector<8x1xf32>
    %9 = arith.mulf %7, %8 : vector<8x1xf32>
    %10 = arith.mulf %4, %4 : vector<8x1xf32>
    %11 = arith.subf %9, %10 : vector<8x1xf32>
    %12 = vector.broadcast %4 : vector<8x1xf32> to vector<8x128xf32>
    %13 = arith.subf %0, %12 : vector<8x128xf32>
    %cst_4 = arith.constant 9.99999974E-6 : f32
    %14 = vector.broadcast %cst_4 : f32 to vector<8x1xf32>
    %15 = arith.addf %11, %14 : vector<8x1xf32>
    %16 = math.rsqrt %15 : vector<8x1xf32>
    %17 = vector.broadcast %16 : vector<8x1xf32> to vector<8x128xf32>
    %18 = arith.mulf %13, %17 : vector<8x128xf32>
    %c0_5 = arith.constant 0 : index
    %c0_6 = arith.constant 0 : index
    %19 = vector.load %arg4[%c0_5, %c0_6] : memref<1x128xf32, #tpu.memory_space<vmem>>, vector<1x128xf32>
    %20 = vector.broadcast %19 : vector<1x128xf32> to vector<8x128xf32>
    %21 = arith.mulf %18, %20 : vector<8x128xf32>
    %c0_7 = arith.constant 0 : index
    %c0_8 = arith.constant 0 : index
    %22 = vector.load %arg5[%c0_7, %c0_8] : memref<1x128xf32, #tpu.memory_space<vmem>>, vector<1x128xf32>
    %23 = vector.broadcast %22 : vector<1x128xf32> to vector<8x128xf32>
    %24 = arith.addf %21, %23 : vector<8x128xf32>
    %25 = arith.truncf %24 : vector<8x128xf32> to vector<8x128xbf16>
    %c0_9 = arith.constant 0 : index
    %c0_10 = arith.constant 0 : index
    %26 = vector.load %arg2[%c0_9, %c0_10] : memref<128x128xbf16, #tpu.memory_space<vmem>>, vector<128x128xbf16>
    %cst_11 = arith.constant dense<0.000000e+00> : vector<8x128xf32>
    %27 = tpu.matmul %25, %26, %cst_11 {dimension_numbers = #tpu.dot_dimension_numbers<[1], [0], [0], [1], [0, 0, 1, 1], [], []>} : vector<8x128xbf16>, vector<128x128xbf16>, vector<8x128xf32> -> vector<8x128xf32>
    %c0_12 = arith.constant 0 : index
    %c0_13 = arith.constant 0 : index
    %28 = vector.load %arg3[%c0_12, %c0_13] : memref<1x128xf32, #tpu.memory_space<vmem>>, vector<1x128xf32>
    %29 = vector.broadcast %28 : vector<1x128xf32> to vector<8x128xf32>
    %30 = arith.addf %27, %29 : vector<8x128xf32>
    %cst_14 = arith.constant 5.000000e-01 : f32
    %31 = vector.broadcast %cst_14 : f32 to vector<8x128xf32>
    %32 = arith.mulf %31, %30 : vector<8x128xf32>
    %33 = math.tanh %32 : vector<8x128xf32>
    %cst_15 = arith.constant 5.000000e-01 : f32
    %34 = vector.broadcast %cst_15 : f32 to vector<8x128xf32>
    %35 = arith.mulf %34, %33 : vector<8x128xf32>
    %cst_16 = arith.constant 5.000000e-01 : f32
    %36 = vector.broadcast %cst_16 : f32 to vector<8x128xf32>
    %37 = arith.addf %35, %36 : vector<8x128xf32>
    %c0_17 = arith.constant 0 : index
    %c0_18 = arith.constant 0 : index
    %38 = vector.load %arg6[%c0_17, %c0_18] : memref<8x128xf32, #tpu.memory_space<vmem>>, vector<8x128xf32>
    tpu.vector_store %arg6[%c0_17, %c0_18], %37 {strides = array<i32>} : memref<8x128xf32, #tpu.memory_space<vmem>>, vector<8x128xf32>,
    return
  }
  func.func @transform_0(%arg0: i32) -> (i32, i32) {
    %c0_i32 = arith.constant 0 : i32
    %c0_i32_0 = arith.constant 0 : i32
    return %arg0, %c0_i32 : i32, i32
  }
  func.func @transform_1(%arg0: i32) -> (i32, i32) {
    %c0_i32 = arith.constant 0 : i32
    %c0_i32_0 = arith.constant 0 : i32
    %c0_i32_1 = arith.constant 0 : i32
    return %c0_i32, %c0_i32_0 : i32, i32
  }
  func.func @transform_2(%arg0: i32) -> (i32, i32) {
    %c0_i32 = arith.constant 0 : i32
    %c0_i32_0 = arith.constant 0 : i32
    %c0_i32_1 = arith.constant 0 : i32
    return %c0_i32, %c0_i32_0 : i32, i32
  }
  func.func @transform_3(%arg0: i32) -> (i32, i32) {
    %c0_i32 = arith.constant 0 : i32
    %c0_i32_0 = arith.constant 0 : i32
    %c0_i32_1 = arith.constant 0 : i32
    return %c0_i32, %c0_i32_0 : i32, i32
  }
  func.func @transform_4(%arg0: i32) -> (i32, i32) {
    %c0_i32 = arith.constant 0 : i32
    %c0_i32_0 = arith.constant 0 : i32
    %c0_i32_1 = arith.constant 0 : i32
    return %c0_i32, %c0_i32_0 : i32, i32
  }
  func.func @transform_5(%arg0: i32) -> (i32, i32) {
    %c0_i32 = arith.constant 0 : i32
    %c0_i32_0 = arith.constant 0 : i32
    return %arg0, %c0_i32 : i32, i32
  }
}

</mosaic_0001>

<bundles_post_ra>
// kernel: tpu_custom_call.1
= control target key start
LH: loop header
LB: loop body
LE: loop exit
PB: predicated region body
PF: predicated region fallthrough
CT: control target
= control target key end

     0   :  { %10 = vsyncpa [#allocation3], 0  ;;  %s372_s0 = inlined_call_operand.hbm [shape: f32[8,128], index: 0, kind: input, shape index: {}]   ;;  %s373_s1 = inlined_call_operand.hbm [shape: bf16[128,128], index: 1, kind: input, shape index: {}]   ;;  %s374_s2 = inlined_call_operand.vmem [shape: f32[1,128], index: 2, kind: input, shape index: {}]   ;;  %s375_s3 = inlined_call_operand.vmem [shape: f32[1,128], index: 3, kind: input, shape index: {}]   ;;  %s376_s4 = inlined_call_operand.vmem [shape: f32[1,128], index: 4, kind: input, shape index: {}]   ;;  %s377_s5 = inlined_call_operand.hbm [shape: f32[8,128], index: 5, kind: output, shape index: {}]  }
   0x1   :  { %11 = vsyncpa [#allocation6], 0 }
   0x2   :  { %12 = vsyncpa [#allocation4], 0  ;;  %s18_s20 = sshll.u32 %s372_s0, 4  ;;  %s319_s21 = smov [#allocation2]   ;;  %s19_s20 = int_to_ptr.hbm [resolvable:$true] %s18_s20 }
   0x3   :  { %s20_s22 = sshll.u32 %s319_s21, 4  ;;  %s28_s25 = sshll.u32 %s373_s1, 4  ;;  %s21_s22 = int_to_ptr.vmem [resolvable:$true] %s20_s22  ;;  %s29_s25 = int_to_ptr.hbm [resolvable:$true] %s28_s25 }
   0x4   :  { %23 = dma.hbm_to_vmem [thread:$0]  %s19_s20, 128, %s21_s22, [#allocation3]  }
   0x5   :  { %s320_s26 = smov [#allocation5]   ;;  %s321_s28 = smov 64  }
   0x6   :  { %s30_s27 = sshll.u32 %s320_s26, 4  ;;  %s322_s29 = smov 4   ;;  %s31_s27 = int_to_ptr.vmem [resolvable:$true] %s30_s27 }
   0x7   :  { %36 = dma.hbm_to_vmem [thread:$0]  %s29_s25, 1024, %s31_s27, [#allocation6], %s321_s28, %s321_s28, %s322_s29  }
   0x8   :  { %313 = dma.done.wait [#allocation3], 128  }
   0x9   :  { %314 = vsyncadd [#allocation3], 4294967168 }
   0xa   :  { %315 = dma.done.wait [#allocation6], 1024  }
   0xb   :  { %316 = vsyncadd [#allocation6], 4294966272  ;;  %v51_v0 = vld [vmem:[#allocation2] sm:$0xff]  ;;  %v227_v3 = vld [vmem:[#allocation5 + $0x30] sm:$0xff] }
   0xc   :  { %52 = vadd.xlane.f32.xlu0 %v51_v0  ;;  %v55_v1 = vmul.f32 %v51_v0, %v51_v0  ;;  %v228_v2 = vld [vmem:[#allocation5 + $0x38] sm:$0xff]  ;;  %v226_v4 = vld [vmem:[#allocation5 + $0x28] sm:$0xff]  ;;  %v225_v5 = vld [vmem:[#allocation5 + $0x20] sm:$0xff] }
   0xd   :  { %153 = vmatpush.bf16.msra.mxu0 %v228_v2  ;;  %v224_v6 = vld [vmem:[#allocation5 + $0x18] sm:$0xff]  ;;  %v223_v7 = vld [vmem:[#allocation5 + $0x10] sm:$0xff]  ;;  %v222_v8 = vld [vmem:[#allocation5 + $0x8] sm:$0xff] }
   0xe   :  { %v221_v10 = vld [vmem:[#allocation5] sm:$0xff]  ;;  %v234_v24 = vld [vmem:[%s375_s3] ss:$0 sm:$0xff]  ;;  %s323_s3 = smov [#allocation7]  }
   0xf   :  { %v235_v27 = vld [vmem:[%s376_s4] ss:$0 sm:$0xff]  ;;  %s176_s9 = sshll.u32 %s323_s3, 4  ;;  %s178_s4 = sshll.u32 %s377_s5, 4  ;;  %s177_s9 = int_to_ptr.vmem [resolvable:$true] %s176_s9  ;;  %s179_s4 = int_to_ptr.hbm [resolvable:$true] %s178_s4 }
  0x10   :  { %v236_v31 = vld [vmem:[%s374_s2] ss:$0 sm:$0xff] }
  0x11   :  { %154 = vmatpush.bf16.msra.mxu0 %v227_v3 }
  0x14   :  { %56 = vadd.xlane.f32.xlu0 %v55_v1 }
  0x15   :  { %155 = vmatpush.bf16.msra.mxu0 %v226_v4 }
  0x19   :  { %156 = vmatpush.bf16.msra.mxu0 %v225_v5 }
  0x1d   :  { %157 = vmatpush.bf16.msra.mxu0 %v224_v6 }
  0x21   :  { %158 = vmatpush.bf16.msra.mxu0 %v223_v7 }
  0x25   :  { %159 = vmatpush.bf16.msra.mxu0 %v222_v8 }
  0x29   :  { %160 = vmatpush.bf16.msra.mxu0 %v221_v10 }
  0x7f   :  { %v53_v9 = vpop.xlane.xlu0 %52 }
  0x80   :  { %v54_v11 = vmul.f32 0.03125, %v53_v9 }
  0x82   :  { %v59_v13 = vmul.f32 %v54_v11, %v54_v11  ;;  %v61_v23 = vsub.f32 %v51_v0, %v54_v11 }
  0x87   :  { %v57_v12 = vpop.xlane.xlu0 %56 }
  0x88   :  { %v58_v14 = vmul.f32 0.03125, %v57_v12 }
  0x8a   :  { %v60_v15 = vsub.f32 %v58_v14, %v59_v13 }
  0x8c   :  { %v62_v16 = vadd.f32 1e-05, %v60_v15 }
  0x8e   :  { %237 = vrsqrt.f32 %v62_v16  ;;  %vm69_vm1 = vweird.f32 %v62_v16 }
  0x94   :  { %v238_v17 = vpop.eup %237 }
  0x95   :  { %v64_v18 = vmul.f32 %v238_v17, %v62_v16  ;;  %vm70_vm0 = vweird.f32 %v238_v17 }
  0x96   :  { %vm71_vm2 = vmor %vm69_vm1, %vm70_vm0 }
  0x97   :  { %v65_v19 = vmul.f32 %v238_v17, %v64_v18 }
  0x99   :  { %v66_v20 = vmul.f32 0.5, %v65_v19 }
  0x9b   :  { %v67_v21 = vsub.f32 1.5, %v66_v20 }
  0x9d   :  { %v68_v22 = vmul.f32 %v238_v17, %v67_v21 }
  0x9f   :  { %v72_v25 = vsel %vm71_vm2, %v238_v17, %v68_v22 }
  0xa0   :  { %v73_v26 = vmul.f32 %v72_v25, %v61_v23 }
  0xa2   :  { %v78_v28 = vmul.f32 %v234_v24, %v73_v26 }
  0xa4   :  { %v83_v29 = vadd.f32 %v235_v27, %v78_v28 }
  0xa6   :  { %v84_v30 = vpack.c.bf16 %v83_v29, %v83_v29 }
  0xa8   :  { %161 = vmatmul.bf16.vlgmr.msra.gmra.mxu0 %v84_v30 }
 0x125   :  { %v162_v32 = vpop.f32.mrf.mxu0 }
 0x126   :  { %v163_v33 = vadd.f32 %v236_v31, %v162_v32 }
 0x128   :  { %v166_v34 = vmul.f32 0.5, %v163_v33 }
 0x12a   :  { %239 = vtanh.f32 %v166_v34 }
 0x12d   :  { %v164_v35 = vpop.f32.mrf.mxu0 }
 0x130   :  { %v240_v36 = vpop.eup %239 }
 0x131   :  { %v168_v37 = vmul.f32 0.5, %v240_v36 }
 0x133   :  { %v169_v38 = vadd.f32 0.5, %v168_v37 }
 0x135   :  { %170 = vst [vmem:[#allocation7] sm:$0xff] %v169_v38 }
 0x136   :  { %181 = dma.vmem_to_hbm [thread:$0]  %s177_s9, 128, %s179_s4, [#allocation4]  }
 0x137   :  { %317 = dma.done.wait [#allocation4], 128  }
 0x138   :  { %318 = vsyncadd [#allocation4], 4294967168 }
 0x139   :  { %186 = vsyncpa [#allocation3], 1 }
 0x13a   :  { %187 = vsyncpa [#allocation6], 1 }
 0x13b   :  { %188 = vsyncpa [#allocation4], 1 }

</bundles_post_ra>
